<compile_context>
chip_gen: v7x
topology: tpu7x:2x2x1
jax: 0.10.0
libtpu: 0.0.40
codegen_flags: <defaults>
</compile_context>

<pallas_src>
import functools

import jax
import jax.numpy as jnp
from jax import lax
from jax.experimental import pallas as pl
from jax.experimental.pallas import tpu as pltpu

CLAMP_MIN = -150.0
CLAMP_MAX = 0.0
BN_EPS = 2.7667575710663686e-05

_TILE_P_TARGET = 32768  # lane-dense pixel tile (multiple of 128)
_LANE = 128


def _round_up(x: int, m: int) -> int:
    return ((x + m - 1) // m) * m


def _affine_clamp_kernel(x_ref, w_ref, b_ref, o_ref):
    # x_ref: (Cin, TP)  w_ref: (Cout, Cin)  b_ref: (Cout, 1)  o_ref: (Cout, TP)
    # K=3 contraction on the (otherwise idle) MXU; the VPU only does the bias
    # add + two clamps, keeping the kernel memory-bound on every generation.
    acc = jnp.dot(
        w_ref[...],
        x_ref[...],
        preferred_element_type=jnp.float32,
        precision=lax.Precision.HIGHEST,
    )
    y = acc + b_ref[...]
    o_ref[...] = jnp.minimum(jnp.maximum(y, CLAMP_MIN), CLAMP_MAX).astype(o_ref.dtype)


def _choose_tile_p(p_pad: int, n: int) -> int:
    """Pick the pixel tile.  `p_pad` is already a multiple of 128."""
    tile = min(_TILE_P_TARGET, p_pad)
    # Keep at least 2 blocks in the (fully parallel) grid so both v7x
    # TensorCores get work, whenever there are >=2 lane-groups of pixels.
    if n * pl.cdiv(p_pad, tile) < 2 and p_pad >= 2 * _LANE:
        tile = _round_up(pl.cdiv(p_pad, 2), _LANE)
    return tile


@functools.partial(jax.jit, static_argnames=("stride", "padding"))
def conv_bn_clamp(x_nchw, w_oihw, bias, gamma, beta, *, stride=2, padding=3):
    n, cin, h, w = x_nchw.shape
    cout = w_oihw.shape[0]
    h_out = (h + 2 * padding - 1) // stride + 1
    w_out = (w + 2 * padding - 1) // stride + 1
    p = h_out * w_out
    m = n * p

    # 1x1 conv with stride/padding == zero-pad + strided sample.  Stay in NCHW
    # so the kernel's output blocks are already NCHW-ordered (no transposes).
    x_pad = jnp.pad(
        x_nchw, ((0, 0), (0, 0), (padding, padding), (padding, padding))
    )
    x_samp = x_pad[:, :, : stride * h_out : stride, : stride * w_out : stride]
    x3 = x_samp.reshape(n, cin, p).astype(jnp.float32)  # (N, Cin, P)

    w_mat = w_oihw.reshape(cout, cin).astype(jnp.float32)  # (Cout, Cin)
    bias = bias.astype(jnp.float32)
    gamma = gamma.astype(jnp.float32)
    beta = beta.astype(jnp.float32)

    # --- Fold training-mode BatchNorm into the conv via tiny input moments ---
    # A single fused Gram over [x ; 1] yields colsum and X X^T in one pass:
    #   conv[m, c] = x[m, :] @ w[c, :] + b[c]
    #   mean_c = mu_x . w_c + b_c
    #   var_c  = w_c^T Cov(x) w_c      (biased, as BN normalization uses)
    # TODO(synk): BN running_mean/var (momentum) buffer updates are stateful
    # and not modeled; only the forward normalization path is implemented.
    ones = jnp.ones((n, 1, p), jnp.float32)
    x_aug = jnp.concatenate([x3, ones], axis=1)              # (N, Cin+1, P)
    g = jnp.einsum("nip,njp->ij", x_aug, x_aug)              # (Cin+1, Cin+1)
    gram = g[:cin, :cin]
    mu_x = g[:cin, cin] / m
    conv_mean = w_mat @ mu_x + bias                          # (Cout,)
    cov = gram / m - jnp.outer(mu_x, mu_x)                   # (Cin, Cin)
    conv_var = jnp.einsum("oi,ij,oj->o", w_mat, cov, w_mat)  # (Cout,)
    conv_var = jnp.maximum(conv_var, 0.0)  # guard cancellation -> rsqrt NaN
    scale = gamma * jax.lax.rsqrt(conv_var + BN_EPS)         # (Cout,)
    w_fold = w_mat * scale[:, None]                          # (Cout, Cin)
    b_fold = ((bias - conv_mean) * scale + beta).reshape(cout, 1)

    # Pad the per-image pixel axis so every block is full and lane-dense
    # (unmasked vst), and pick a large tile to amortize per-step overhead.
    p_pad = _round_up(p, _LANE)
    tile_p = _choose_tile_p(p_pad, n)
    n_tiles = pl.cdiv(p_pad, tile_p)
    p_full = n_tiles * tile_p
    if p_full != p:
        x3 = jnp.pad(x3, ((0, 0), (0, 0), (0, p_full - p)))

    grid = (n, n_tiles)

    cost = pl.CostEstimate(
        flops=2 * m * cin * cout + 3 * m * cout,
        transcendentals=0,
        bytes_accessed=4 * (n * cin * p_full + n * cout * p_full + cout * cin + cout),
    )

    out3 = pl.pallas_call(
        _affine_clamp_kernel,
        out_shape=jax.ShapeDtypeStruct((n, cout, p_full), jnp.float32),
        grid=grid,
        in_specs=[
            pl.BlockSpec((None, cin, tile_p), lambda i, j: (i, 0, j)),
            pl.BlockSpec((cout, cin), lambda i, j: (0, 0)),
            pl.BlockSpec((cout, 1), lambda i, j: (0, 0)),
        ],
        out_specs=pl.BlockSpec((None, cout, tile_p), lambda i, j: (i, 0, j)),
        compiler_params=pltpu.CompilerParams(
            dimension_semantics=("parallel", "parallel"),
            vmem_limit_bytes=32 * 1024 * 1024,
        ),
        cost_estimate=cost,
    )(x3, w_fold, b_fold)

    # (N, Cout, P_full) -> drop pixel padding -> (N, Cout, H_out, W_out).
    return out3[:, :, :p].reshape(n, cout, h_out, w_out)


if __name__ == "__main__":
    key = jax.random.PRNGKey(0)
    k_x, k_w, k_b = jax.random.split(key, 3)

    # Small shapes consistent with the module (Conv2d expects Cin=3).
    N, CIN, H, W = 2, 3, 16, 16
    COUT = 32
    STRIDE, PAD = 2, 3

    x = jax.random.normal(k_x, (N, CIN, H, W), dtype=jnp.float32)

    # Deterministic parameter init (Kaiming-uniform-like bound for 1x1 conv).
    fan_in = CIN * 1 * 1
    bound = 1.0 / (fan_in ** 0.5)
    conv_w = jax.random.uniform(
        k_w, (COUT, CIN, 1, 1), minval=-bound, maxval=bound, dtype=jnp.float32
    )
    conv_b = jax.random.uniform(
        k_b, (COUT,), minval=-bound, maxval=bound, dtype=jnp.float32
    )
    bn_gamma = jnp.ones((COUT,), jnp.float32)
    bn_beta = jnp.zeros((COUT,), jnp.float32)

    out = conv_bn_clamp(
        x, conv_w, conv_b, bn_gamma, bn_beta, stride=STRIDE, padding=PAD
    )
    out = jax.block_until_ready(out)

    # ---- Reference (plain XLA, two-pass batch-norm) for validation ----
    h_out = (H + 2 * PAD - 1) // STRIDE + 1
    w_out = (W + 2 * PAD - 1) // STRIDE + 1
    x_pad = jnp.pad(x, ((0, 0), (0, 0), (PAD, PAD), (PAD, PAD)))
    x_samp = x_pad[:, :, : STRIDE * h_out : STRIDE, : STRIDE * w_out : STRIDE]
    conv_ref = (
        jnp.einsum("oi,nihw->nohw", conv_w.reshape(COUT, CIN), x_samp)
        + conv_b[None, :, None, None]
    )
    mean_r = jnp.mean(conv_ref, axis=(0, 2, 3), keepdims=True)
    var_r = jnp.mean((conv_ref - mean_r) ** 2, axis=(0, 2, 3), keepdims=True)
    bn_ref = (conv_ref - mean_r) * jax.lax.rsqrt(var_r + BN_EPS)
    bn_ref = bn_ref * bn_gamma[None, :, None, None] + bn_beta[None, :, None, None]
    ref = jnp.minimum(jnp.maximum(bn_ref, CLAMP_MIN), CLAMP_MAX)

    assert out.shape == (N, COUT, h_out, w_out), out.shape
    assert bool(jnp.all(jnp.isfinite(out)))
    assert bool(jnp.all(out >= CLAMP_MIN)) and bool(jnp.all(out <= CLAMP_MAX))
    max_err = float(jnp.max(jnp.abs(out - ref)))
    assert bool(jnp.allclose(out, ref, atol=2e-3, rtol=1e-3)), max_err

    print("KERNEL_OK")
</pallas_src>

<mosaic_0001>
module attributes {stable_mosaic.version = 11 : i64} {
  func.func @_affine_clamp_kernel(%arg0: i32, %arg1: i32, %arg2: memref<1x3x128xf32, #tpu.memory_space<vmem>>, %arg3: memref<32x3xf32, #tpu.memory_space<vmem>>, %arg4: memref<32x1xf32, #tpu.memory_space<vmem>>, %arg5: memref<1x32x128xf32, #tpu.memory_space<vmem>>) attributes {dimension_semantics = [#tpu.dimension_semantics<parallel>, #tpu.dimension_semantics<parallel>], iteration_bounds = array<i64: 2, 1>, scalar_prefetch = 0 : i64, scratch_operands = 0 : i64, tpu.core_type = #tpu.core_type<tc>, window_params = [{transform_indices = @transform_0, window_bounds = array<i64: 1, 3, 128>}, {pipeline_mode = #tpu.pipeline_mode<synchronous>, transform_indices = @transform_1, window_bounds = array<i64: 32, 3>}, {pipeline_mode = #tpu.pipeline_mode<synchronous>, transform_indices = @transform_2, window_bounds = array<i64: 32, 1>}, {transform_indices = @transform_3, window_bounds = array<i64: 1, 32, 128>}]} {
    %c0 = arith.constant 0 : index
    %c0_0 = arith.constant 0 : index
    %0 = vector.load %arg3[%c0, %c0_0] : memref<32x3xf32, #tpu.memory_space<vmem>>, vector<32x3xf32>
    %c0_1 = arith.constant 0 : index
    %c0_2 = arith.constant 0 : index
    %c0_3 = arith.constant 0 : index
    %1 = vector.load %arg2[%c0_1, %c0_2, %c0_3] : memref<1x3x128xf32, #tpu.memory_space<vmem>>, vector<1x3x128xf32>
    %2 = vector.shape_cast %1 : vector<1x3x128xf32> to vector<3x128xf32>
    %cst = arith.constant dense<0.000000e+00> : vector<32x128xf32>
    %3 = tpu.matmul %0, %2, %cst {dimension_numbers = #tpu.dot_dimension_numbers<[1], [0], [0], [1], [0, 0, 1, 1], [], []>, precision = #tpu.contract_precision<fp32>} : vector<32x3xf32>, vector<3x128xf32>, vector<32x128xf32> -> vector<32x128xf32>
    %c0_4 = arith.constant 0 : index
    %c0_5 = arith.constant 0 : index
    %4 = vector.load %arg4[%c0_4, %c0_5] : memref<32x1xf32, #tpu.memory_space<vmem>>, vector<32x1xf32>
    %5 = vector.broadcast %4 : vector<32x1xf32> to vector<32x128xf32>
    %6 = arith.addf %3, %5 : vector<32x128xf32>
    %cst_6 = arith.constant -1.500000e+02 : f32
    %7 = vector.broadcast %cst_6 : f32 to vector<32x128xf32>
    %8 = arith.maximumf %6, %7 : vector<32x128xf32>
    %cst_7 = arith.constant 0.000000e+00 : f32
    %9 = vector.broadcast %cst_7 : f32 to vector<32x128xf32>
    %10 = arith.minimumf %8, %9 : vector<32x128xf32>
    %c0_8 = arith.constant 0 : index
    %c0_9 = arith.constant 0 : index
    %c0_10 = arith.constant 0 : index
    %11 = vector.load %arg5[%c0_8, %c0_9, %c0_10] : memref<1x32x128xf32, #tpu.memory_space<vmem>>, vector<1x32x128xf32>
    %12 = vector.shape_cast %11 : vector<1x32x128xf32> to vector<32x128xf32>
    %13 = vector.shape_cast %10 : vector<32x128xf32> to vector<1x32x128xf32>
    tpu.vector_store %arg5[%c0_8, %c0_9, %c0_10], %13 {strides = array<i32>} : memref<1x32x128xf32, #tpu.memory_space<vmem>>, vector<1x32x128xf32>,
    return
  }
  func.func @transform_0(%arg0: i32, %arg1: i32) -> (i32, i32, i32) {
    %c0_i32 = arith.constant 0 : i32
    %c0_i32_0 = arith.constant 0 : i32
    return %arg0, %c0_i32, %arg1 : i32, i32, i32
  }
  func.func @transform_1(%arg0: i32, %arg1: i32) -> (i32, i32) {
    %c0_i32 = arith.constant 0 : i32
    %c0_i32_0 = arith.constant 0 : i32
    %c0_i32_1 = arith.constant 0 : i32
    return %c0_i32, %c0_i32_0 : i32, i32
  }
  func.func @transform_2(%arg0: i32, %arg1: i32) -> (i32, i32) {
    %c0_i32 = arith.constant 0 : i32
    %c0_i32_0 = arith.constant 0 : i32
    %c0_i32_1 = arith.constant 0 : i32
    return %c0_i32, %c0_i32_0 : i32, i32
  }
  func.func @transform_3(%arg0: i32, %arg1: i32) -> (i32, i32, i32) {
    %c0_i32 = arith.constant 0 : i32
    %c0_i32_0 = arith.constant 0 : i32
    return %arg0, %c0_i32, %arg1 : i32, i32, i32
  }
}

</mosaic_0001>

<bundles_post_ra>
// kernel: conv_bn_clamp.1
= control target key start
LH: loop header
LB: loop body
LE: loop exit
PB: predicated region body
PF: predicated region fallthrough
CT: control target
= control target key end

     0   :  { %s1097_s12 = smov 0   ;;  %s1099_s13 = smov 0   ;;  %s1182_s0 = inlined_call_operand.vmem [shape: f32[2,3,128], index: 0, kind: input, shape index: {}]   ;;  %s1183_s1 = inlined_call_operand.vmem [shape: f32[32,3], index: 1, kind: input, shape index: {}]   ;;  %s1184_s2 = inlined_call_operand.vmem [shape: f32[32,1], index: 2, kind: input, shape index: {}]   ;;  %s1185_s3 = inlined_call_operand.vmem [shape: f32[2,32,128], index: 3, kind: output, shape index: {}]  }
   0x1   :  { %s1101_s14 = smov 0  }
   0x2 LB: > { %s25_s15 = sadd.s32 1, %s1070_s13  ;;  %p916_p0 = scmp.ge.s32.totalorder %s1074_s14, 1  ;;  %s1074_s14 = sphi %s1101_s14, %s13_s14   ;;  %s1070_s13 = sphi %s1099_s13, %s1187_s13   ;;  %s1066_s12 = sphi %s1097_s12, %s1186_s12  }
   0x3   : > { %p27_p1 = scmp.ge.s32.totalorder %s25_s15, 2  ;;  %p155_p2 = scmp.lt.s32.totalorder %s1074_s14, 3 }
   0x5   : > { %s1189_s15 = smov (%p27_p1, %s25_s15), 0  ;;  %p156_p3 = pnand %p916_p0, %p155_p2 }
   0x6   : > { %p184_p4 = scmp.lt.s32.totalorder (!%p156_p3), %s1066_s12, 1  ;;  %v199_v0 = vld [vmem:[%s1183_s1] sm:$0xff] (!%p156_p3)  ;;  %vm228_vm0 = vcmask (!%p156_p3), 23552   ;;  %v200_v1 = vld [vmem:[%s1183_s1 + $0x8] sm:$0xff] (!%p156_p3)  ;;  %v201_v2 = vld [vmem:[%s1183_s1 + $0x10] sm:$0xff] (!%p156_p3)  ;;  %v1076_v12 = vmov (!%p156_p3), 0  }
   0x7   : > { %159 = sbr.rel (%p156_p3) target bundleno = 266 (0x10a), region = 32  ;;  %v230_v3 = vsel (!%p156_p3), %vm228_vm0, %v199_v0, 0  ;;  %v233_v4 = vsel (!%p156_p3), %vm228_vm0, %v200_v1, 0  ;;  %v236_v5 = vsel (!%p156_p3), %vm228_vm0, %v201_v2, 0  ;;  %v202_v6 = vld [vmem:[%s1183_s1 + $0x18] sm:$0xff] (!%p156_p3)  ;;  %v204_v7 = vld [vmem:[%s1184_s2] sm:$0xff] (!%p156_p3)  ;;  %1050 = vset.pattern.permute.xlu0 (!%p156_p3), %v1076_v12  ;;  %1051 = vset.pattern.permute.xlu1 (!%p156_p3), %v1076_v12 }
   0x8   : > { %v1132_v8 = vand.u32 (!%p156_p3), 4294901760, %v230_v3  ;;  %v1134_v9 = vand.u32 (!%p156_p3), 4294901760, %v233_v4  ;;  %v1136_v10 = vand.u32 (!%p156_p3), 4294901760, %v236_v5  ;;  %v239_v11 = vsel (!%p156_p3), %vm228_vm0, %v202_v6, 0  ;;  %v206_v13 = vld [vmem:[%s1184_s2 + $0x10] sm:$0xff] (!%p156_p3)  ;;  %210 = vperm.xlu0 (!%p156_p3), %1050, %v204_v7   ;;  %v205_v18 = vld [vmem:[%s1184_s2 + $0x8] sm:$0xff] (!%p156_p3) }
   0x9   : > { %v1141_v14 = vand.u32 (!%p156_p3), 4294901760, %v239_v11  ;;  %220 = vperm.xlu1 (!%p156_p3), %1051, %v206_v13   ;;  %vm241_vm1 = vcmask (!%p156_p3), 1042432   ;;  %v207_v19 = vld [vmem:[%s1184_s2 + $0x18] sm:$0xff] (!%p156_p3) }
   0xa   : > { %v312_v15 = vsub.f32 (!%p156_p3), %v230_v3, %v1132_v8  ;;  %v322_v16 = vsub.f32 (!%p156_p3), %v233_v4, %v1134_v9  ;;  %v332_v17 = vsub.f32 (!%p156_p3), %v236_v5, %v1136_v10 }
   0xb   : > { %v342_v20 = vsub.f32 (!%p156_p3), %v239_v11, %v1141_v14 }
   0xc   : > { %v313_v22 = vand.u32 (!%p156_p3), 4294901760, %v312_v15  ;;  %v323_v23 = vand.u32 (!%p156_p3), 4294901760, %v322_v16  ;;  %v333_v24 = vand.u32 (!%p156_p3), 4294901760, %v332_v17  ;;  %215 = vperm.xlu0 (!%p156_p3), %1050, %v205_v18  }
   0xd   : > { %v343_v26 = vand.u32 (!%p156_p3), 4294901760, %v342_v20  ;;  %225 = vperm.xlu1 (!%p156_p3), %1051, %v207_v19  }
   0xe   : > { %s1191_s12 = smov (!%p184_p4, %s1066_s12), 1  ;;  %979 = vmatprep.mubr.f32.mxu0 %v313_v22  ;;  %v314_v28 = vsub.f32 %v312_v15, %v313_v22  ;;  %v324_v29 = vsub.f32 %v322_v16, %v323_v23  ;;  %v334_v30 = vsub.f32 %v332_v17, %v333_v24 }
   0xf   : > { %s917_s28 = sshll.u32 %s1191_s12, 2  ;;  %v344_v31 = vsub.f32 %v342_v20, %v343_v26  ;;  %s922_s9 = sshll.u32 %s1191_s12, 5 }
  0x10   : > { %s190_s8 = scalar_lea.vmem %s1182_s0, %s917_s28  ;;  %v315_v32 = vand.u32 4294901760, %v314_v28  ;;  %v325_v33 = vand.u32 4294901760, %v324_v29  ;;  %v335_v34 = vand.u32 4294901760, %v334_v30  ;;  %s198_s16 = scalar_lea.vmem %s1185_s3, %s922_s9 }
  0x11   : > { %v203_v21 = vld [vmem:[%s190_s8] sm:$0x7]  ;;  %v345_v37 = vand.u32 4294901760, %v344_v31 }
  0x12   : > { %v243_v25 = vsel %vm241_vm1, %v203_v21, 0  ;;  %955 = vmatprep.mubr.f32.mxu1 %v315_v32 }
  0x13   : > { %v246_v27 = vand.u32 4294901760, %v243_v25 }
  0x15   : > { %977 = vmatprep.subr.mxu0 %v246_v27  ;;  %953 = vmatprep.subr.mxu1 %v246_v27  ;;  %v353_v35 = vsub.f32 %v243_v25, %v246_v27 }
  0x16   : > { %978 = vmatpush3.msra.mxu0 %v246_v27  ;;  %954 = vmatpush3.msra.mxu1 %v246_v27 }
  0x17   : > { %980 = vmatmul.mubr.f32.vlgmr.msra.gmra.mrb[0].mxu0 %v323_v23  ;;  %v354_v36 = vand.u32 4294901760, %v353_v35  ;;  %956 = vmatmul.mubr.f32.vlgmr.msra.gmra.mrb[0].mxu1 %v325_v33 }
  0x18   : > { %982 = vmatprep.mubr.f32.mxu0 %v333_v24  ;;  %958 = vmatprep.mubr.f32.mxu1 %v335_v34 }
  0x19   : > { %v355_v38 = vsub.f32 %v353_v35, %v354_v36  ;;  %985 = vmatprep.subr.mxu0 %v354_v36 }
  0x1a   : > { %986 = vmatpush3.msra.mxu0 %v354_v36 }
  0x1b   : > { %983 = vmatmul.mubr.f32.gmra.mrb[2].mxu0 %v343_v26  ;;  %v356_v39 = vand.u32 4294901760, %v355_v38  ;;  %993 = vmatprep.subr.mxu0 %v246_v27 }
  0x1c   : > { %959 = vmatmul.mubr.f32.gmra.mrb[2].mxu1 %v345_v37  ;;  %987 = vmatprep.mubr.f32.mxu0 %v1132_v8 }
  0x1d   : > { %961 = vmatprep.subr.mxu1 %v356_v39  ;;  %963 = vmatprep.mubr.f32.mxu1 %v1132_v8 }
  0x1e   : > { %962 = vmatpush3.msra.mxu1 %v356_v39 }
  0x1f   : > { %988 = vmatmul.mubr.f32.vlgmr.msra.gmra.mrb[0].mxu0 %v1134_v9  ;;  %969 = vmatprep.subr.mxu1 %v353_v35 }
  0x20   : > { %964 = vmatmul.mubr.f32.vlgmr.msra.gmra.mrb[0].mxu1 %v1134_v9  ;;  %990 = vmatprep.mubr.f32.mxu0 %v1136_v10 }
  0x21   : > { %966 = vmatprep.mubr.f32.mxu1 %v1136_v10  ;;  %970 = vmatpush3.msra.mxu1 %v353_v35 }
  0x22   : > { %994 = vmatpush3.msra.mxu0 %v246_v27 }
  0x23   : > { %991 = vmatmul.mubr.f32.gmra.mrb[2].mxu0 %v1141_v14 }
  0x24   : > { %967 = vmatmul.mubr.f32.gmra.mrb[2].mxu1 %v1141_v14  ;;  %995 = vmatprep.mubr.f32.mxu0 %v1132_v8 }
  0x25   : > { %971 = vmatprep.mubr.f32.mxu1 %v312_v15 }
  0x27   : > { %996 = vmatmul.mubr.f32.vlgmr.msra.gmra.mrb[0].mxu0 %v1134_v9 }
  0x28   : > { %972 = vmatmul.mubr.f32.vlgmr.msra.gmra.mrb[0].mxu1 %v322_v16  ;;  %998 = vmatprep.mubr.f32.mxu0 %v1136_v10 }
  0x29   : > { %974 = vmatprep.mubr.f32.mxu1 %v332_v17 }
  0x2b   : > { %999 = vmatmul.mubr.f32.gmra.mrb[2].mxu0 %v1141_v14 }
  0x2c   : > { %975 = vmatmul.mubr.f32.gmra.mrb[2].mxu1 %v342_v20 }
  0x87   : > { %v211_v40 = vpop.permute.xlu0 %210 }
  0x88   : > { %v221_v41 = vpop.permute.xlu1 %220 }
  0x8b   : > { %v216_v42 = vpop.permute.xlu0 %215 }
  0x8c   : > { %v226_v51 = vpop.permute.xlu1 %225 }
  0xfa   : > { %v997_v43 = vpop.f32.mrb[0].mxu0 }
  0xfb   : > { %v973_v44 = vpop.f32.mrb[0].mxu1  ;;  %v798_v45 = vpop.f32.mrb[1].mxu0 }
  0xfc   : > { %v1001_v46 = vadd.f32 %v973_v44, %v216_v42  ;;  %v515_v47 = vpop.f32.mrb[1].mxu1 }
  0xfd   : > { %v1003_v48 = vadd.f32 %v515_v47, %v211_v40 }
  0xfe   : > { %v1002_v49 = vadd.f32 %v1001_v46, %v997_v43  ;;  %v1000_v50 = vpop.f32.mrb[2].mxu0 }
  0xff   : > { %v1004_v52 = vadd.f32 %v1003_v48, %v798_v45  ;;  %v976_v53 = vpop.f32.mrb[2].mxu1  ;;  %v810_v54 = vpop.f32.mrb[3].mxu0 }
 0x100   : > { %v821_v55 = vmax.f32 %v1002_v49, -150.0  ;;  %v1005_v56 = vadd.f32 %v976_v53, %v226_v51  ;;  %v529_v57 = vpop.f32.mrb[3].mxu1 }
 0x101   : > { %v820_v58 = vmax.f32 %v1004_v52, -150.0  ;;  %v1007_v59 = vadd.f32 %v529_v57, %v221_v41 }
 0x102   : > { %v825_v60 = vmin.f32 %v821_v55, 0.0  ;;  %v1006_v61 = vadd.f32 %v1005_v56, %v1000_v50 }
 0x103   : > { %v824_v62 = vmin.f32 %v820_v58, 0.0  ;;  %v1008_v63 = vadd.f32 %v1007_v59, %v810_v54 }
 0x104   : > { %829 = vst [vmem:[%s198_s16 + $0x8] sm:$0xff] %v825_v60  ;;  %v823_v0 = vmax.f32 %v1006_v61, -150.0 }
 0x105   : > { %828 = vst [vmem:[%s198_s16] sm:$0xff] %v824_v62  ;;  %v822_v1 = vmax.f32 %v1008_v63, -150.0 }
 0x106   : > { %v827_v2 = vmin.f32 %v823_v0, 0.0 }
 0x107   : > { %v826_v3 = vmin.f32 %v822_v1, 0.0 }
 0x108   : > { %831 = vst [vmem:[%s198_s16 + $0x18] sm:$0xff] %v827_v2 }
 0x109   : > { %830 = vst [vmem:[%s198_s16 + $0x10] sm:$0xff] %v826_v3 }
 0x10a PF: > { %s13_s14 = sadd.s32 1, %s1074_s14   ;;  %s1186_s12 = smov %s1070_s13 }
 0x10b   : > { %p10_p5 = scmp.ge.s32.totalorder %s13_s14, 4   ;;  %s1187_s13 = smov %s1189_s15 }
 0x10d   :  { %12 = sbr.rel (!%p10_p5) target bundleno = 2 (0x2), region = 62 }

</bundles_post_ra>
